<compile_context>
chip_gen: v7x
topology: tpu7x:2x2x1
jax: 0.10.0
libtpu: 0.0.40
codegen_flags: <defaults>
</compile_context>

<pallas_src>
import functools

import jax
import jax.numpy as jnp
import numpy as np
from jax.experimental import pallas as pl
from jax.experimental.pallas import tpu as pltpu


# ----------------------------- kernels -------------------------------------


def _ffn_eval_kernel(x_ref, w1_ref, b1_ref, w2_ref, b2_ref, o_ref, acc_ref):
    k = pl.program_id(1)

    # ---- Linear 1 on this hidden tile (MXU, f32 accumulation) ----
    h = jnp.dot(x_ref[...], w1_ref[...], preferred_element_type=jnp.float32)
    h = h + b1_ref[...].astype(jnp.float32)                    # [TM, TH]

    @pl.when(k == 0)
    def _():
        acc_ref[...] = jnp.zeros_like(acc_ref)

    # ---- Linear 2 partial product, accumulated over hidden tiles ----
    acc_ref[...] += jnp.dot(h.astype(w2_ref.dtype), w2_ref[...],
                            preferred_element_type=jnp.float32)

    @pl.when(k == pl.num_programs(1) - 1)
    def _():
        o_ref[...] = (acc_ref[...] + b2_ref[...].astype(jnp.float32)
                      ).astype(o_ref.dtype)


def _ffn_train_kernel(x_ref, w1_ref, b1_ref, w2_ref, b2_ref, bits_ref,
                      o_ref, acc_ref, *, keep_threshold, scale):
    k = pl.program_id(1)

    h = jnp.dot(x_ref[...], w1_ref[...], preferred_element_type=jnp.float32)
    h = h + b1_ref[...].astype(jnp.float32)                    # [TM, TH]

    # Inverted dropout: integer-domain keep decision (no shift / int->float
    # convert), scale by 1/(1-p) in f32 before downcasting for the 2nd matmul.
    keep = bits_ref[...] < jnp.uint32(keep_threshold)
    h = jnp.where(keep, h * jnp.float32(scale), jnp.float32(0.0))

    @pl.when(k == 0)
    def _():
        acc_ref[...] = jnp.zeros_like(acc_ref)

    acc_ref[...] += jnp.dot(h.astype(w2_ref.dtype), w2_ref[...],
                            preferred_element_type=jnp.float32)

    @pl.when(k == pl.num_programs(1) - 1)
    def _():
        o_ref[...] = (acc_ref[...] + b2_ref[...].astype(jnp.float32)
                      ).astype(o_ref.dtype)


# ----------------------------- wrapper --------------------------------------


def _pick_tile(dim, preferred, candidates):
    """Largest candidate tile <= preferred that divides dim; full dim if none."""
    if dim <= preferred:
        return dim
    for t in candidates:
        if t <= preferred and dim % t == 0:
            return t
    return dim


def feed_forward(x, w1t, b1, w2t, b2, *, p_dropout=0.1, train=False,
                 rng_key=None, compute_dtype=None, tm=None, th=None):
    """x: [M, D_in]  w1t: [D_in, D_hid]  b1: [D_hid]  w2t: [D_hid, D_in]  b2: [D_in]"""
    M, D_in = x.shape
    D_hid = w1t.shape[1]
    assert w1t.shape == (D_in, D_hid)
    assert w2t.shape == (D_hid, D_in)

    out_dtype = x.dtype
    if compute_dtype is not None:
        # bf16 MXU inputs (f32 accumulation stays inside the kernel).
        x = x.astype(compute_dtype)
        w1t = w1t.astype(compute_dtype)
        w2t = w2t.astype(compute_dtype)

    # Tile selection.  TM along M (sublane axis, multiple of 8), TH along the
    # hidden/reduction axis (lane axis of W1T, multiple of 128).  Defaults are
    # sized for v5e/v6e; on v7x (64 MiB VMEM) pass smaller th/tm explicitly.
    TM = tm if tm is not None else _pick_tile(M, 256, (256, 128, 64, 32, 16, 8))
    TH = th if th is not None else _pick_tile(D_hid, 512, (512, 384, 256, 128))
    assert M % TM == 0 and D_hid % TH == 0
    grid = (M // TM, D_hid // TH)

    b1_2d = b1.reshape(1, D_hid)
    b2_2d = b2.reshape(1, D_in)

    x_spec = pl.BlockSpec((TM, D_in), lambda i, k: (i, 0))   # resident across k
    w1_spec = pl.BlockSpec((D_in, TH), lambda i, k: (0, k))
    b1_spec = pl.BlockSpec((1, TH), lambda i, k: (0, k))
    w2_spec = pl.BlockSpec((TH, D_in), lambda i, k: (k, 0))
    b2_spec = pl.BlockSpec((1, D_in), lambda i, k: (0, 0))
    out_spec = pl.BlockSpec((TM, D_in), lambda i, k: (i, 0))  # accumulator tile

    scratch_shapes = [pltpu.VMEM((TM, D_in), jnp.float32)]

    compiler_params = None
    if jax.default_backend() == "tpu":
        compiler_params = pltpu.CompilerParams(
            # M tiles are independent -> megacore-parallel on v7x; the hidden
            # (reduction) axis is last and marked arbitrary.
            dimension_semantics=("parallel", "arbitrary"),
            vmem_limit_bytes=48 * 1024 * 1024,
        )

    if train and p_dropout > 0.0:
        if rng_key is None:
            rng_key = jax.random.PRNGKey(0)
        # TODO(synk): dropout randomness comes from jax.random, not torch's RNG
        # stream, so train-mode masks cannot bit-match PyTorch.
        bits = jax.random.bits(rng_key, (M, D_hid), dtype=jnp.uint32)
        keep_threshold = int(round((1.0 - p_dropout) * float(2**32)))
        keep_threshold = min(keep_threshold, 2**32 - 1)
        kernel = functools.partial(_ffn_train_kernel,
                                   keep_threshold=keep_threshold,
                                   scale=1.0 / (1.0 - p_dropout))
        bits_spec = pl.BlockSpec((TM, TH), lambda i, k: (i, k))
        in_specs = [x_spec, w1_spec, b1_spec, w2_spec, b2_spec, bits_spec]
        args = (x, w1t, b1_2d, w2t, b2_2d, bits)
    else:
        kernel = _ffn_eval_kernel
        in_specs = [x_spec, w1_spec, b1_spec, w2_spec, b2_spec]
        args = (x, w1t, b1_2d, w2t, b2_2d)

    return pl.pallas_call(
        kernel,
        out_shape=jax.ShapeDtypeStruct((M, D_in), out_dtype),
        grid=grid,
        in_specs=in_specs,
        out_specs=out_spec,
        scratch_shapes=scratch_shapes,
        compiler_params=compiler_params,
    )(*args)


# ----------------------------- demo / test ----------------------------------


if __name__ == "__main__":
    # Small shapes consistent with the module (Linear D_in -> D_hid -> D_in).
    M, D_in, D_hid = 16, 128, 1024      # grid = (1, 2): exercises accumulation
    p_dropout = 0.1

    key = jax.random.PRNGKey(0)
    kx, k1w, k1b, k2w, k2b, kd = jax.random.split(key, 6)

    # nn.Linear-style init: U(-1/sqrt(fan_in), 1/sqrt(fan_in)).
    bound1 = 1.0 / np.sqrt(D_in)
    bound2 = 1.0 / np.sqrt(D_hid)
    x = jax.random.normal(kx, (M, D_in), jnp.float32)
    w1t = jax.random.uniform(k1w, (D_in, D_hid), jnp.float32, -bound1, bound1)
    b1 = jax.random.uniform(k1b, (D_hid,), jnp.float32, -bound1, bound1)
    w2t = jax.random.uniform(k2w, (D_hid, D_in), jnp.float32, -bound2, bound2)
    b2 = jax.random.uniform(k2b, (D_in,), jnp.float32, -bound2, bound2)

    # Fused Pallas kernel (eval-mode dropout == identity, like .eval()).
    out = feed_forward(x, w1t, b1, w2t, b2, p_dropout=p_dropout, train=False)
    out = jax.block_until_ready(out)

    # Pure-JAX reference (eval mode).
    ref = (x @ w1t + b1) @ w2t + b2
    np.testing.assert_allclose(np.asarray(out), np.asarray(ref),
                               rtol=1e-3, atol=1e-3)

    # Exercise the train-mode (dropout) path once; sanity-check that roughly
    # p_dropout of the hidden units were dropped by comparing output norms.
    out_train = feed_forward(x, w1t, b1, w2t, b2, p_dropout=p_dropout,
                             train=True, rng_key=kd)
    out_train = jax.block_until_ready(out_train)
    assert np.isfinite(np.asarray(out_train)).all()

    print("KERNEL_OK")
</pallas_src>

<mosaic_0001>
module attributes {stable_mosaic.version = 11 : i64} {
  func.func @_ffn_eval_kernel(%arg0: i32, %arg1: i32, %arg2: memref<16x128xf32, #tpu.memory_space<vmem>>, %arg3: memref<128x512xf32, #tpu.memory_space<vmem>>, %arg4: memref<1x512xf32, #tpu.memory_space<vmem>>, %arg5: memref<512x128xf32, #tpu.memory_space<vmem>>, %arg6: memref<1x128xf32, #tpu.memory_space<vmem>>, %arg7: memref<16x128xf32, #tpu.memory_space<vmem>>, %arg8: memref<16x128xf32, #tpu.memory_space<vmem>>) attributes {dimension_semantics = [#tpu.dimension_semantics<arbitrary>, #tpu.dimension_semantics<arbitrary>], iteration_bounds = array<i64: 1, 2>, scalar_prefetch = 0 : i64, scratch_operands = 1 : i64, tpu.core_type = #tpu.core_type<tc>, window_params = [{transform_indices = @transform_0, window_bounds = array<i64: 16, 128>}, {transform_indices = @transform_1, window_bounds = array<i64: 128, 512>}, {transform_indices = @transform_2, window_bounds = array<i64: 1, 512>}, {transform_indices = @transform_3, window_bounds = array<i64: 512, 128>}, {pipeline_mode = #tpu.pipeline_mode<synchronous>, transform_indices = @transform_4, window_bounds = array<i64: 1, 128>}, {transform_indices = @transform_5, window_bounds = array<i64: 16, 128>}]} {
    %c0 = arith.constant 0 : index
    %c0_0 = arith.constant 0 : index
    %0 = vector.load %arg2[%c0, %c0_0] : memref<16x128xf32, #tpu.memory_space<vmem>>, vector<16x128xf32>
    %c0_1 = arith.constant 0 : index
    %c0_2 = arith.constant 0 : index
    %1 = vector.load %arg3[%c0_1, %c0_2] : memref<128x512xf32, #tpu.memory_space<vmem>>, vector<128x512xf32>
    %cst = arith.constant dense<0.000000e+00> : vector<16x512xf32>
    %2 = tpu.matmul %0, %1, %cst {dimension_numbers = #tpu.dot_dimension_numbers<[1], [0], [0], [1], [0, 0, 1, 1], [], []>} : vector<16x128xf32>, vector<128x512xf32>, vector<16x512xf32> -> vector<16x512xf32>
    %c0_3 = arith.constant 0 : index
    %c0_4 = arith.constant 0 : index
    %3 = vector.load %arg4[%c0_3, %c0_4] : memref<1x512xf32, #tpu.memory_space<vmem>>, vector<1x512xf32>
    %4 = vector.broadcast %3 : vector<1x512xf32> to vector<16x512xf32>
    %5 = arith.addf %2, %4 : vector<16x512xf32>
    %c0_i32 = arith.constant 0 : i32
    %6 = arith.cmpi eq, %arg1, %c0_i32 : i32
    %7 = arith.extui %6 : i1 to i32
    %c0_i32_5 = arith.constant 0 : i32
    %8 = arith.cmpi ne, %7, %c0_i32_5 : i32
    scf.if %8 {
      %cst_14 = arith.constant 0.000000e+00 : f32
      %17 = vector.broadcast %cst_14 : f32 to vector<16x128xf32>
      %c0_15 = arith.constant 0 : index
      %c0_16 = arith.constant 0 : index
      %18 = vector.load %arg8[%c0_15, %c0_16] : memref<16x128xf32, #tpu.memory_space<vmem>>, vector<16x128xf32>
      tpu.vector_store %arg8[%c0_15, %c0_16], %17 {strides = array<i32>} : memref<16x128xf32, #tpu.memory_space<vmem>>, vector<16x128xf32>,
    } else {
    }
    %c0_6 = arith.constant 0 : index
    %c0_7 = arith.constant 0 : index
    %9 = vector.load %arg8[%c0_6, %c0_7] : memref<16x128xf32, #tpu.memory_space<vmem>>, vector<16x128xf32>
    %c0_8 = arith.constant 0 : index
    %c0_9 = arith.constant 0 : index
    %10 = vector.load %arg5[%c0_8, %c0_9] : memref<512x128xf32, #tpu.memory_space<vmem>>, vector<512x128xf32>
    %cst_10 = arith.constant dense<0.000000e+00> : vector<16x128xf32>
    %11 = tpu.matmul %5, %10, %cst_10 {dimension_numbers = #tpu.dot_dimension_numbers<[1], [0], [0], [1], [0, 0, 1, 1], [], []>} : vector<16x512xf32>, vector<512x128xf32>, vector<16x128xf32> -> vector<16x128xf32>
    %12 = arith.addf %9, %11 : vector<16x128xf32>
    %c0_11 = arith.constant 0 : index
    %c0_12 = arith.constant 0 : index
    %13 = vector.load %arg8[%c0_11, %c0_12] : memref<16x128xf32, #tpu.memory_space<vmem>>, vector<16x128xf32>
    tpu.vector_store %arg8[%c0_11, %c0_12], %12 {strides = array<i32>} : memref<16x128xf32, #tpu.memory_space<vmem>>, vector<16x128xf32>,
    %c1_i32 = arith.constant 1 : i32
    %14 = arith.cmpi eq, %arg1, %c1_i32 : i32
    %15 = arith.extui %14 : i1 to i32
    %c0_i32_13 = arith.constant 0 : i32
    %16 = arith.cmpi ne, %15, %c0_i32_13 : i32
    scf.if %16 {
      %c0_14 = arith.constant 0 : index
      %c0_15 = arith.constant 0 : index
      %17 = vector.load %arg8[%c0_14, %c0_15] : memref<16x128xf32, #tpu.memory_space<vmem>>, vector<16x128xf32>
      %c0_16 = arith.constant 0 : index
      %c0_17 = arith.constant 0 : index
      %18 = vector.load %arg6[%c0_16, %c0_17] : memref<1x128xf32, #tpu.memory_space<vmem>>, vector<1x128xf32>
      %19 = vector.broadcast %18 : vector<1x128xf32> to vector<16x128xf32>
      %20 = arith.addf %17, %19 : vector<16x128xf32>
      %c0_18 = arith.constant 0 : index
      %c0_19 = arith.constant 0 : index
      %21 = vector.load %arg7[%c0_18, %c0_19] : memref<16x128xf32, #tpu.memory_space<vmem>>, vector<16x128xf32>
      tpu.vector_store %arg7[%c0_18, %c0_19], %20 {strides = array<i32>} : memref<16x128xf32, #tpu.memory_space<vmem>>, vector<16x128xf32>,
    } else {
    }
    return
  }
  func.func @transform_0(%arg0: i32, %arg1: i32) -> (i32, i32) {
    %c0_i32 = arith.constant 0 : i32
    %c0_i32_0 = arith.constant 0 : i32
    return %arg0, %c0_i32 : i32, i32
  }
  func.func @transform_1(%arg0: i32, %arg1: i32) -> (i32, i32) {
    %c0_i32 = arith.constant 0 : i32
    %c0_i32_0 = arith.constant 0 : i32
    return %c0_i32, %arg1 : i32, i32
  }
  func.func @transform_2(%arg0: i32, %arg1: i32) -> (i32, i32) {
    %c0_i32 = arith.constant 0 : i32
    %c0_i32_0 = arith.constant 0 : i32
    return %c0_i32, %arg1 : i32, i32
  }
  func.func @transform_3(%arg0: i32, %arg1: i32) -> (i32, i32) {
    %c0_i32 = arith.constant 0 : i32
    %c0_i32_0 = arith.constant 0 : i32
    return %arg1, %c0_i32 : i32, i32
  }
  func.func @transform_4(%arg0: i32, %arg1: i32) -> (i32, i32) {
    %c0_i32 = arith.constant 0 : i32
    %c0_i32_0 = arith.constant 0 : i32
    %c0_i32_1 = arith.constant 0 : i32
    return %c0_i32, %c0_i32_0 : i32, i32
  }
  func.func @transform_5(%arg0: i32, %arg1: i32) -> (i32, i32) {
    %c0_i32 = arith.constant 0 : i32
    %c0_i32_0 = arith.constant 0 : i32
    return %arg0, %c0_i32 : i32, i32
  }
}

</mosaic_0001>

<bundles_post_ra>
// kernel: tpu_custom_call.1
= control target key start
LH: loop header
LB: loop body
LE: loop exit
PB: predicated region body
PF: predicated region fallthrough
CT: control target
= control target key end

     0   :  { %s1973_s0 = inlined_call_operand.hbm [shape: f32[16,128], index: 0, kind: input, shape index: {}]   ;;  %s1974_s1 = inlined_call_operand.hbm [shape: f32[128,1024], index: 1, kind: input, shape index: {}]   ;;  %s1975_s2 = inlined_call_operand.hbm [shape: f32[1,1024], index: 2, kind: input, shape index: {}]   ;;  %s1976_s3 = inlined_call_operand.hbm [shape: f32[1024,128], index: 3, kind: input, shape index: {}]   ;;  %s1977_s4 = inlined_call_operand.vmem [shape: f32[1,128], index: 4, kind: input, shape index: {}]   ;;  %s1978_s5 = inlined_call_operand.hbm [shape: f32[16,128], index: 5, kind: output, shape index: {}]  }
   0x1   :  { %1988 = sst [smem:[#allocation18_spill]] %s1974_s1 }
   0x2   :  { %10 = vsyncpa [#allocation4], 0 }
   0x3   :  { %11 = vsyncpa [#allocation7], 0 }
   0x4   :  { %13 = vsyncpa [#allocation7 + $0x1], 0 }
   0x5   :  { %14 = vsyncpa [#allocation10], 0 }
   0x6   :  { %16 = vsyncpa [#allocation10 + $0x1], 0 }
   0x7   :  { %17 = vsyncpa [#allocation5], 0  ;;  %s1542_s18 = smov 0   ;;  %s1544_s19 = smov 0  }
   0x8   :  { %s1546_s20 = smov 0   ;;  %s1548_s21 = smov 0  }
   0x9   :  { %s1550_s22 = smov 0   ;;  %s1552_s23 = smov 0  }
   0xa LB: > { %s32_s24 = sadd.s32 1, %s1492_s22  ;;  %s68_s25 = sadd.s32 1, %s1484_s20  ;;  %s1496_s23 = sphi %s1552_s23, %s23_s23   ;;  %s1492_s22 = sphi %s1550_s22, %s2010_s22   ;;  %s1488_s21 = sphi %s1548_s21, %s2009_s21   ;;  %s1484_s20 = sphi %s1546_s20, %s2008_s20   ;;  %s1480_s19 = sphi %s1544_s19, %s2007_s19   ;;  %s1476_s18 = sphi %s1542_s18, %s2006_s18  }
   0xb   : > { %p33_p0 = scmp.ge.s32.totalorder %s32_s24, 2  ;;  %p75_p1 = scmp.ne.s32.totalorder %s1484_s20, %s1480_s19 }
   0xc   : > { %p76_p2 = scmp.eq.s32.totalorder %s1496_s23, 0  ;;  %p1227_p4 = scmp.lt.s32.totalorder %s1496_s23, 2 }
   0xd   : > { %s2012_s24 = smov (%p33_p0, %s32_s24), 0  ;;  %s223_s27 = sand.u32 1, %s1496_s23  }
   0xe   : > { %1989 = sst [smem:[#allocation16_spill]] %s2012_s24  ;;  %p77_p3 = por %p76_p2, %p75_p1 }
   0xf   : > { %s65_s26 = ssub.s32 %s1492_s22, %s2012_s24  ;;  %s1584_s28 = sand.u32 1, %s1484_s20  }
  0x10   : > { %p66_p5 = scmp.eq.s32.totalorder %s65_s26, 0  ;;  %s991_s29 = sshll.u32 %s1492_s22, 9 }
  0x11   : > { %s1979_s6 = sshll.u32 %s1584_s28, 9  ;;  %s1991_s1 = sld [smem:[#allocation18_spill]] }
  0x12   : > { %s1588_s30 = scalar_select %p66_p5, %s1484_s20, %s68_s25  }
  0x13   : > { %p1596_p6 = pnand %p1227_p4, %p77_p3  ;;  %s227_s11 = scalar_lea.vmem [#allocation6], %s1979_s6 }
  0x14   : > { %1990 = sst [smem:[#allocation17_spill]] %s1588_s30  ;;  %s234_s12 = sshll.u32 %s227_s11, 4  ;;  %s1602_s12 = int_to_ptr.vmem [resolvable:$true] %s234_s12 }
  0x15   : > { %s1992_s10 = scalar_select %p1596_p6, 1, 0 }
  0x16   : > { %s1604_s13 = scalar_lea.sflag [#allocation7], %s223_s27  ;;  %p1610_p8 = pneg %p1596_p6 }
  0x17   : > { %s1594_s9 = scalar_lea.hbm %s1991_s1, %s991_s29  ;;  %s1295_s25 = scalar_lea.hbm %s1991_s1, 16384 }
  0x18   : > { %s1290_s14 = scalar_lea.hbm %s1594_s9, 8192  ;;  %p1296_p11 = scmp.lt.u32.totalorder %s1594_s9, %s1991_s1 }
  0x19   : > { %p1291_p7 = scmp.ne.s32.totalorder %s1594_s9, %s1290_s14  ;;  %p1297_p12 = scmp.lt.u32.totalorder %s1295_s25, %s1290_s14 }
  0x1a   : > { %s1993_s15 = scalar_select %p1610_p8, 1, 0 }
  0x1b   : > { %p1293_p9 = pnand %p1610_p8, %p1291_p7  ;;  %p1298_p13 = por %p1297_p12, %p1296_p11 }
  0x1c   : > { %p1299_p0 = scmp.lt.u32.totalorder %s1290_s14, %s1594_s9 }
  0x1d   : > { %p1294_p10 = pneg %p1293_p9 }
  0x1e   : > { %p1300_p1 = por %p1299_p0, %p1298_p13 }
  0x20   : > { %p1301_p2 = pnand %p1300_p1, %p1294_p10 }
  0x22   : > { %1304 = shalt.err (!%p1301_p2)
}
  0x23   : > { %s1305_s27 = scalar_lea.vmem %s1602_s12, 8192  ;;  %s1498_s7 = smov [#allocation6]  }
  0x24   : > { %p1306_p3 = scmp.ne.s32.totalorder %s1602_s12, %s1305_s27  ;;  %s1310_s8 = sshll.u32 %s1498_s7, 4  ;;  %s1311_s8 = int_to_ptr.vmem [resolvable:$false] %s1310_s8 }
  0x25   : > { %s1312_s11 = scalar_lea.vmem %s1311_s8, 16384  ;;  %p1313_p7 = scmp.lt.s32.totalorder %s1602_s12, %s1311_s8 }
  0x26   : > { %p1308_p4 = pnand %p1306_p3, %p1610_p8  ;;  %p1314_p9 = scmp.lt.s32.totalorder %s1312_s11, %s1305_s27 }
  0x28   : > { %p1309_p5 = pneg %p1308_p4  ;;  %p1315_p11 = por %p1314_p9, %p1313_p7 }
  0x2a   : > { %p1316_p12 = pnand %p1315_p11, %p1309_p5 }
  0x2c   : > { %1319 = shalt.err (!%p1316_p12)
}
  0x2d   : > { %s1499_s14 = smov 1024   ;;  %s1500_s16 = smov 512  }
  0x2e   : > { %s1501_s17 = smov 32   ;;  %s1635_s25 = sadd.s32 4294967295, %s1496_s23  }
  0x2f   : > { %1219 = dma.hbm_to_vmem [thread:$0]  (!%p1596_p6), %s1594_s9, 8192, %s1602_s12, %s1604_s13, %s1499_s14, %s1500_s16, %s1501_s17  }
  0x30   : > { %p81_p10 = scmp.ne.s32.totalorder %s1480_s19, %s1476_s18  ;;  %p1981_p13 = scmp.eq.s32.totalorder %s1635_s25, 0 }
  0x31   : > { %p967_p0 = scmp.ge.s32.totalorder %s1496_s23, 1  ;;  %p191_p1 = scmp.lt.s32.totalorder %s1496_s23, 3 }
  0x32   : > { %p1644_p2 = por %p1981_p13, %p81_p10  ;;  %s1502_s9 = smov [#allocation3]  }
  0x33   : > { %p1648_p3 = pnand %p967_p0, %p191_p1  ;;  %s206_s12 = sshll.u32 %s1502_s9, 4  ;;  %s1652_s12 = int_to_ptr.vmem [resolvable:$true] %s206_s12 }
  0x34   : > { %s1994_s26 = scalar_select %p1644_p2, 1, 0 }
  0x35   : > { %s1995_s29 = scalar_select %p1648_p3, 1, 0 }
  0x36   : > { %p1212_p4 = pneg %p1648_p3  ;;  %s973_s18 = sshll.u32 %s1584_s28, 2 }
  0x37   : > { %s992_s27 = sshll.u32 %s1492_s22, 6  ;;  %s248_s16 = scalar_lea.vmem [#allocation8], %s973_s18 }
  0x38   : > { %p1660_p5 = pnand %p1212_p4, %p1981_p13  ;;  %s1667_s14 = scalar_lea.hbm %s1975_s2, %s992_s27 }
  0x39   : > { %s256_s17 = sshll.u32 %s248_s16, 4  ;;  %s1320_s1 = scalar_lea.hbm %s1973_s0, 256  ;;  %s1669_s17 = int_to_ptr.vmem [resolvable:$true] %s256_s17 }
  0x3a   : > { %p1321_p7 = scmp.ne.s32.totalorder %s1973_s0, %s1320_s1  ;;  %p1322_p9 = pneg %p1660_p5 }
  0x3b   : > { %p1327_p10 = scmp.lt.u32.totalorder %s1320_s1, %s1973_s0 }
  0x3c   : > { %p1323_p11 = pnand %p1322_p9, %p1321_p7 }
  0x3e   : > { %p1324_p12 = pneg %p1323_p11 }
  0x40   : > { %p1329_p0 = pnand %p1327_p10, %p1324_p12 }
  0x42   : > { %1332 = shalt.err (!%p1329_p0)
}
  0x43   : > { %s1333_s18 = scalar_lea.vmem %s1652_s12, 256  ;;  %p1341_p2 = scmp.lt.s32.totalorder %s1652_s12, %s1652_s12 }
  0x44   : > { %p1334_p1 = scmp.ne.s32.totalorder %s1652_s12, %s1333_s18  ;;  %p1342_p3 = scmp.lt.s32.totalorder %s1333_s18, %s1333_s18 }
  0x46   : > { %p1336_p4 = pnand %p1334_p1, %p1322_p9  ;;  %p1343_p6 = por %p1342_p3, %p1341_p2 }
  0x48   : > { %p1337_p13 = pneg %p1336_p4 }
  0x4a   : > { %p1344_p8 = pnand %p1343_p6, %p1337_p13 }
  0x4c   : > { %1347 = shalt.err (!%p1344_p8)
}
  0x4d   : > { %s1503_s24 = smov 128   ;;  %s1504_s1 = smov 8  }
  0x4e   : > { %1215 = dma.hbm_to_vmem [thread:$0]  (!%p1660_p5), %s1973_s0, 256, %s1652_s12, [#allocation4], %s1503_s24, %s1503_s24, %s1504_s1  }
  0x4f   : > { %s1348_s27 = scalar_lea.hbm %s1667_s14, 64  ;;  %p1997_p8 = scmp.ne.s32.totalorder %s1993_s15, 0 }
  0x50   : > { %p1349_p6 = scmp.ne.s32.totalorder %s1667_s14, %s1348_s27  ;;  %s1353_s8 = scalar_lea.hbm %s1975_s2, 128 }
  0x51   : > { %p1354_p3 = scmp.lt.u32.totalorder %s1667_s14, %s1975_s2  ;;  %p1355_p7 = scmp.lt.u32.totalorder %s1353_s8, %s1348_s27 }
  0x52   : > { %p1351_p13 = pnand %p1349_p6, %p1997_p8  ;;  %p1357_p11 = scmp.lt.u32.totalorder %s1348_s27, %s1667_s14 }
  0x53   : > { %p1356_p9 = por %p1355_p7, %p1354_p3 }
  0x54   : > { %p1352_p2 = pneg %p1351_p13 }
  0x55   : > { %p1358_p12 = por %p1357_p11, %p1356_p9 }
  0x57   : > { %p1359_p10 = pnand %p1358_p12, %p1352_p2 }
  0x59   : > { %1362 = shalt.err (!%p1359_p10)
}
  0x5a   : > { %s1363_s12 = scalar_lea.vmem %s1669_s17, 64  ;;  %s1505_s7 = smov [#allocation8]  }
  0x5b   : > { %p1364_p5 = scmp.ne.s32.totalorder %s1669_s17, %s1363_s12  ;;  %s1368_s30 = sshll.u32 %s1505_s7, 4  ;;  %s1369_s30 = int_to_ptr.vmem [resolvable:$false] %s1368_s30 }
  0x5c   : > { %s1370_s6 = scalar_lea.vmem %s1369_s30, 128  ;;  %p1371_p4 = scmp.lt.s32.totalorder %s1669_s17, %s1369_s30 }
  0x5d   : > { %p1366_p0 = pnand %p1364_p5, %p1997_p8  ;;  %p1372_p6 = scmp.lt.s32.totalorder %s1370_s6, %s1363_s12 }
  0x5f   : > { %p1367_p1 = pneg %p1366_p0  ;;  %p1373_p13 = por %p1372_p6, %p1371_p4 }
  0x61   : > { %p1374_p3 = pnand %p1373_p13, %p1367_p1 }
  0x63   : > { %1377 = shalt.err (!%p1374_p3)
}
  0x64   : > { %p1998_p2 = scmp.ne.s32.totalorder %s1992_s10, 0  ;;  %s993_s27 = sshll.u32 %s1492_s22, 13 }
  0x65   : > { %s1999_s16 = sshll.u32 %s1584_s28, 9  ;;  %s1723_s12 = scalar_lea.hbm %s1976_s3, %s993_s27 }
  0x66   : > { %1222 = dma.hbm_to_vmem [thread:$0]  (!%p1998_p2), %s1667_s14, 64, %s1669_s17, %s1604_s13  }
  0x67   : > { %s267_s9 = scalar_lea.vmem [#allocation9], %s1999_s16  ;;  %s264_s7 = scalar_lea.sflag [#allocation10], %s1584_s28 }
  0x68   : > { %s274_s8 = sshll.u32 %s267_s9, 4  ;;  %s1378_s30 = scalar_lea.hbm %s1723_s12, 8192  ;;  %s1725_s8 = int_to_ptr.vmem [resolvable:$true] %s274_s8 }
  0x69   : > { %p1379_p7 = scmp.ne.s32.totalorder %s1723_s12, %s1378_s30  ;;  %s1383_s17 = scalar_lea.hbm %s1976_s3, 16384 }
  0x6a   : > { %p1384_p12 = scmp.lt.u32.totalorder %s1723_s12, %s1976_s3  ;;  %p1385_p10 = scmp.lt.u32.totalorder %s1383_s17, %s1378_s30 }
  0x6b   : > { %p1381_p9 = pnand %p1379_p7, %p1997_p8  ;;  %p1387_p0 = scmp.lt.u32.totalorder %s1378_s30, %s1723_s12 }
  0x6c   : > { %p1386_p5 = por %p1385_p10, %p1384_p12 }
  0x6d   : > { %p1382_p11 = pneg %p1381_p9 }
  0x6e   : > { %p1388_p1 = por %p1387_p0, %p1386_p5 }
  0x70   : > { %p1389_p4 = pnand %p1388_p1, %p1382_p11 }
  0x72   : > { %1392 = shalt.err (!%p1389_p4)
}
  0x73   : > { %s1393_s27 = scalar_lea.vmem %s1725_s8, 8192  ;;  %s1506_s9 = smov [#allocation9]  }
  0x74   : > { %p1394_p6 = scmp.ne.s32.totalorder %s1725_s8, %s1393_s27  ;;  %s1398_s11 = sshll.u32 %s1506_s9, 4  ;;  %s1399_s11 = int_to_ptr.vmem [resolvable:$false] %s1398_s11 }
  0x75   : > { %s1400_s18 = scalar_lea.vmem %s1399_s11, 16384  ;;  %p1401_p7 = scmp.lt.s32.totalorder %s1725_s8, %s1399_s11 }
  0x76   : > { %p1396_p13 = pnand %p1394_p6, %p1997_p8  ;;  %p1402_p9 = scmp.lt.s32.totalorder %s1400_s18, %s1393_s27 }
  0x78   : > { %p1397_p3 = pneg %p1396_p13  ;;  %p1403_p12 = por %p1402_p9, %p1401_p7 }
  0x7a   : > { %p1404_p10 = pnand %p1403_p12, %p1397_p3 }
  0x7c   : > { %1407 = shalt.err (!%p1404_p10)
}
  0x7d   : > { %1225 = dma.hbm_to_vmem [thread:$0]  (!%p1998_p2), %s1723_s12, 8192, %s1725_s8, %s264_s7, %s1503_s24, %s1503_s24, %s1504_s1  }
  0x7e   : > { %p2000_p8 = scmp.ne.s32.totalorder %s1995_s29, 0 }
  0x7f   : > { %p2001_p11 = scmp.eq.s32.totalorder (!%p2000_p8), %s1635_s25, 0 }
  0x80   : > { %286 = sbr.rel (%p2000_p8) target bundleno = 696 (0x2b8), region = 40 }
  0x87   : > { %1459 = dma.done.wait (%p2001_p11), [#allocation4], 256   ;;  %p2002_p5 = pmov %p2001_p11 }
  0x88   : > { %s292_s10 = sand.u32 1, %s1635_s25   ;;  %s294_s15 = sand.u32 1, %s1480_s19  }
  0x89   : > { %1461 = vsyncadd (%p2002_p5), [#allocation4], 4294967040  ;;  %s981_s30 = sshll.u32 %s294_s15, 9  ;;  %s293_s13 = scalar_lea.sflag [#allocation7], %s292_s10 }
  0x8a   : > { %s1762_s28 = scalar_lea.vmem [#allocation6], %s981_s30  ;;  %p2003_p0 = scmp.ne.s32.totalorder %s1994_s26, 0 }
  0x8c   : > { %1463 = dma.done.wait (%p2003_p0), %s293_s13, 8256  }
  0x8d   : > { %1465 = vsyncadd (%p2003_p0), %s293_s13, 4294959040  ;;  %s982_s29 = sshll.u32 %s294_s15, 2  ;;  %s311_s1 = scalar_lea.sflag [#allocation10], %s294_s15 }
  0x8e   : > { %s1768_s24 = scalar_lea.vmem [#allocation8], %s982_s29  ;;  %s1770_s8 = scalar_lea.vmem [#allocation9], %s981_s30 }
  0x8f   : > { %1467 = dma.done.wait (%p2003_p0), %s311_s1, 8192  }
  0x90   : > { %1469 = vsyncadd (%p2003_p0), %s311_s1, 4294959104  ;;  %v1507_v0 = vmov 0.0   ;;  %v354_v1 = vld [vmem:[%s1762_s28 + $0x8] sm:$0xff]  ;;  %v356_v3 = vld [vmem:[%s1762_s28 + $0x18] sm:$0xff]  ;;  %p984_p2 = scmp.ne.s32.totalorder %s1488_s21, 0 }
  0x91   : > { %503 = vmatprep.mubr.f32.mxu0 %v1507_v0  ;;  %580 = vmatprep.mubr.f32.mxu1 %v1507_v0  ;;  %v358_v2 = vld [vmem:[%s1762_s28 + $0x28] sm:$0xff]  ;;  %v360_v5 = vld [vmem:[%s1762_s28 + $0x38] sm:$0xff]  ;;  %v353_v6 = vld [vmem:[%s1762_s28] sm:$0xff] }
  0x92   : > { %v1070_v4 = vpack.c.bf16 %v358_v2, %v354_v1  ;;  %v357_v7 = vld [vmem:[%s1762_s28 + $0x20] sm:$0xff]  ;;  %v1102_v8 = vpack.c.bf16 %v360_v5, %v356_v3  ;;  %v355_v10 = vld [vmem:[%s1762_s28 + $0x10] sm:$0xff]  ;;  %v362_v12 = vld [vmem:[%s1762_s28 + $0x48] sm:$0xff] }
  0x93   : > { %v1072_v9 = vpack.c.bf16 %v357_v7, %v353_v6  ;;  %v359_v11 = vld [vmem:[%s1762_s28 + $0x30] sm:$0xff]  ;;  %v366_v14 = vld [vmem:[%s1762_s28 + $0x68] sm:$0xff]  ;;  %v364_v15 = vld [vmem:[%s1762_s28 + $0x58] sm:$0xff] }
  0x94   : > { %1071 = vmatprep.subr.bf16.mxu0 %v1070_v4  ;;  %v1104_v13 = vpack.c.bf16 %v359_v11, %v355_v10  ;;  %v368_v16 = vld [vmem:[%s1762_s28 + $0x78] sm:$0xff]  ;;  %1103 = vmatprep.subr.bf16.mxu1 %v1102_v8  ;;  %v1074_v17 = vpack.c.bf16 %v366_v14, %v362_v12  ;;  %v361_v19 = vld [vmem:[%s1762_s28 + $0x40] sm:$0xff]  ;;  %v363_v21 = vld [vmem:[%s1762_s28 + $0x50] sm:$0xff] }
  0x95   : > { %1073 = vmatpush1.bf16.msra.mxu0 %v1072_v9  ;;  %v1106_v18 = vpack.c.bf16 %v368_v16, %v364_v15  ;;  %v365_v20 = vld [vmem:[%s1762_s28 + $0x60] sm:$0xff]  ;;  %v367_v23 = vld [vmem:[%s1762_s28 + $0x70] sm:$0xff]  ;;  %v370_v24 = vld [vmem:[%s1762_s28 + $0x88] sm:$0xff] }
  0x96   : > { %1105 = vmatpush1.bf16.msra.mxu1 %v1104_v13  ;;  %v1076_v22 = vpack.c.bf16 %v365_v20, %v361_v19  ;;  %v374_v25 = vld [vmem:[%s1762_s28 + $0xa8] sm:$0xff]  ;;  %1075 = vmatprep.subr.bf16.mxu0 %v1074_v17  ;;  %v1108_v26 = vpack.c.bf16 %v367_v23, %v363_v21  ;;  %v372_v28 = vld [vmem:[%s1762_s28 + $0x98] sm:$0xff]  ;;  %v369_v30 = vld [vmem:[%s1762_s28 + $0x80] sm:$0xff] }
  0x97   : > { %1107 = vmatprep.subr.bf16.mxu1 %v1106_v18  ;;  %v1078_v27 = vpack.c.bf16 %v374_v25, %v370_v24  ;;  %v376_v29 = vld [vmem:[%s1762_s28 + $0xb8] sm:$0xff]  ;;  %v373_v32 = vld [vmem:[%s1762_s28 + $0xa0] sm:$0xff]  ;;  %v371_v33 = vld [vmem:[%s1762_s28 + $0x90] sm:$0xff] }
  0x98   : > { %v1110_v31 = vpack.c.bf16 %v376_v29, %v372_v28  ;;  %v375_v34 = vld [vmem:[%s1762_s28 + $0xb0] sm:$0xff]  ;;  %v1080_v35 = vpack.c.bf16 %v373_v32, %v369_v30  ;;  %v378_v36 = vld [vmem:[%s1762_s28 + $0xc8] sm:$0xff]  ;;  %v380_v38 = vld [vmem:[%s1762_s28 + $0xd8] sm:$0xff] }
  0x99   : > { %1077 = vmatpush1.bf16.msra.mxu0 %v1076_v22  ;;  %v382_v37 = vld [vmem:[%s1762_s28 + $0xe8] sm:$0xff]  ;;  %v1112_v39 = vpack.c.bf16 %v375_v34, %v371_v33  ;;  %v384_v41 = vld [vmem:[%s1762_s28 + $0xf8] sm:$0xff]  ;;  %v377_v42 = vld [vmem:[%s1762_s28 + $0xc0] sm:$0xff] }
  0x9a   : > { %1109 = vmatpush1.bf16.msra.mxu1 %v1108_v26  ;;  %1079 = vmatprep.subr.bf16.mxu0 %v1078_v27  ;;  %v1082_v40 = vpack.c.bf16 %v382_v37, %v378_v36  ;;  %v381_v43 = vld [vmem:[%s1762_s28 + $0xe0] sm:$0xff]  ;;  %v1114_v44 = vpack.c.bf16 %v384_v41, %v380_v38  ;;  %v379_v45 = vld [vmem:[%s1762_s28 + $0xd0] sm:$0xff]  ;;  %v386_v47 = vld [vmem:[%s1762_s28 + $0x108] sm:$0xff]  ;;  %v419_v36 = vlaneseq }
  0x9b   : > { %1111 = vmatprep.subr.bf16.mxu1 %v1110_v31  ;;  %v383_v46 = vld [vmem:[%s1762_s28 + $0xf0] sm:$0xff]  ;;  %v390_v48 = vld [vmem:[%s1762_s28 + $0x128] sm:$0xff]  ;;  %v388_v49 = vld [vmem:[%s1762_s28 + $0x118] sm:$0xff]  ;;  %v1084_v51 = vpack.c.bf16 %v381_v43, %v377_v42 }
  0x9c   : > { %v392_v50 = vld [vmem:[%s1762_s28 + $0x138] sm:$0xff]  ;;  %v1116_v52 = vpack.c.bf16 %v383_v46, %v379_v45  ;;  %v1086_v53 = vpack.c.bf16 %v390_v48, %v386_v47  ;;  %v385_v54 = vld [vmem:[%s1762_s28 + $0x100] sm:$0xff]  ;;  %v387_v56 = vld [vmem:[%s1762_s28 + $0x110] sm:$0xff]  ;;  %v420_v37 = vshrl.u32 %v419_v36, 7 }
  0x9d   : > { %1081 = vmatpush1.bf16.msra.mxu0 %v1080_v35  ;;  %v389_v55 = vld [vmem:[%s1762_s28 + $0x120] sm:$0xff]  ;;  %v1118_v57 = vpack.c.bf16 %v392_v50, %v388_v49  ;;  %v391_v58 = vld [vmem:[%s1762_s28 + $0x130] sm:$0xff]  ;;  %v394_v59 = vld [vmem:[%s1762_s28 + $0x148] sm:$0xff] }
  0x9e   : > { %1113 = vmatpush1.bf16.msra.mxu1 %v1112_v39  ;;  %1083 = vmatprep.subr.bf16.mxu0 %v1082_v40  ;;  %v398_v60 = vld [vmem:[%s1762_s28 + $0x168] sm:$0xff]  ;;  %v396_v61 = vld [vmem:[%s1762_s28 + $0x158] sm:$0xff]  ;;  %v1088_v63 = vpack.c.bf16 %v389_v55, %v385_v54  ;;  %v1120_v1 = vpack.c.bf16 %v391_v58, %v387_v56  ;;  %v393_v3 = vld [vmem:[%s1762_s28 + $0x140] sm:$0xff]  ;;  %v421_v38 = vsub.s32 0, %v420_v37  ;;  %v429_v40 = vsub.s32 2, %v420_v37 }
  0x9f   : > { %1115 = vmatprep.subr.bf16.mxu1 %v1114_v44  ;;  %v400_v62 = vld [vmem:[%s1762_s28 + $0x178] sm:$0xff]  ;;  %v1090_v2 = vpack.c.bf16 %v398_v60, %v394_v59  ;;  %v397_v4 = vld [vmem:[%s1762_s28 + $0x160] sm:$0xff]  ;;  %v395_v5 = vld [vmem:[%s1762_s28 + $0x150] sm:$0xff]  ;;  %v425_v41 = vsub.s32 1, %v420_v37  ;;  %v433_v42 = vsub.s32 3, %v420_v37 }
  0xa0   : > { %v1122_v6 = vpack.c.bf16 %v400_v62, %v396_v61  ;;  %v399_v7 = vld [vmem:[%s1762_s28 + $0x170] sm:$0xff]  ;;  %v402_v8 = vld [vmem:[%s1762_s28 + $0x188] sm:$0xff]  ;;  %v404_v10 = vld [vmem:[%s1762_s28 + $0x198] sm:$0xff]  ;;  %v1092_v12 = vpack.c.bf16 %v397_v4, %v393_v3  ;;  %v1508_v62 = vmov (!%p984_p2), 0.0  }
  0xa1   : > { %1085 = vmatpush1.bf16.msra.mxu0 %v1084_v51  ;;  %v406_v9 = vld [vmem:[%s1762_s28 + $0x1a8] sm:$0xff]  ;;  %v408_v11 = vld [vmem:[%s1762_s28 + $0x1b8] sm:$0xff]  ;;  %v1124_v13 = vpack.c.bf16 %v399_v7, %v395_v5  ;;  %v401_v15 = vld [vmem:[%s1762_s28 + $0x180] sm:$0xff]  ;;  %597 = vst [vmem:[#allocation2] sm:$0xff] (!%p984_p2), %v1508_v62 }
  0xa2   : > { %1117 = vmatpush1.bf16.msra.mxu1 %v1116_v52  ;;  %1087 = vmatprep.subr.bf16.mxu0 %v1086_v53  ;;  %v1094_v14 = vpack.c.bf16 %v406_v9, %v402_v8  ;;  %v405_v16 = vld [vmem:[%s1762_s28 + $0x1a0] sm:$0xff]  ;;  %v403_v17 = vld [vmem:[%s1762_s28 + $0x190] sm:$0xff]  ;;  %v1126_v18 = vpack.c.bf16 %v408_v11, %v404_v10  ;;  %v410_v20 = vld [vmem:[%s1762_s28 + $0x1c8] sm:$0xff]  ;;  %598 = vst [vmem:[#allocation2 + $0x8] sm:$0xff] (!%p984_p2), %v1508_v62 }
  0xa3   : > { %1119 = vmatprep.subr.bf16.mxu1 %v1118_v57  ;;  %v407_v19 = vld [vmem:[%s1762_s28 + $0x1b0] sm:$0xff]  ;;  %v414_v21 = vld [vmem:[%s1762_s28 + $0x1e8] sm:$0xff]  ;;  %v412_v22 = vld [vmem:[%s1762_s28 + $0x1d8] sm:$0xff]  ;;  %v1096_v24 = vpack.c.bf16 %v405_v16, %v401_v15 }
  0xa4   : > { %v416_v23 = vld [vmem:[%s1762_s28 + $0x1f8] sm:$0xff]  ;;  %v1128_v25 = vpack.c.bf16 %v407_v19, %v403_v17  ;;  %v1098_v26 = vpack.c.bf16 %v414_v21, %v410_v20  ;;  %v409_v27 = vld [vmem:[%s1762_s28 + $0x1c0] sm:$0xff]  ;;  %v411_v30 = vld [vmem:[%s1762_s28 + $0x1d0] sm:$0xff] }
  0xa5   : > { %1089 = vmatpush1.bf16.msra.mxu0 %v1088_v63  ;;  %v413_v28 = vld [vmem:[%s1762_s28 + $0x1e0] sm:$0xff]  ;;  %v1130_v29 = vpack.c.bf16 %v416_v23, %v412_v22  ;;  %v415_v31 = vld [vmem:[%s1762_s28 + $0x1f0] sm:$0xff]  ;;  %v352_v35 = vld [vmem:[#allocation3 + $0x8] sm:$0xff] }
  0xa6   : > { %1121 = vmatpush1.bf16.msra.mxu1 %v1120_v1  ;;  %1091 = vmatprep.subr.bf16.mxu0 %v1090_v2  ;;  %v1100_v32 = vpack.c.bf16 %v413_v28, %v409_v27  ;;  %v1132_v33 = vpack.c.bf16 %v415_v31, %v411_v30  ;;  %v351_v34 = vld [vmem:[#allocation3] sm:$0xff]  ;;  %v417_v39 = vld [vmem:[%s1768_s24] sm:$0xf] }
  0xa7   : > { %1123 = vmatprep.subr.bf16.mxu1 %v1122_v6  ;;  %v422_v43 = vrot.slane %v417_v39, %v421_v38  ;;  %v430_v44 = vrot.slane %v417_v39, %v429_v40  ;;  %v426_v45 = vrot.slane %v417_v39, %v425_v41  ;;  %v434_v46 = vrot.slane %v417_v39, %v433_v42 }
  0xa9   : > { %1093 = vmatpush1.bf16.msra.mxu0 %v1092_v12 }
  0xaa   : > { %1125 = vmatpush1.bf16.msra.mxu1 %v1124_v13  ;;  %1095 = vmatprep.subr.bf16.mxu0 %v1094_v14 }
  0xab   : > { %1127 = vmatprep.subr.bf16.mxu1 %v1126_v18 }
  0xad   : > { %1097 = vmatpush1.bf16.msra.mxu0 %v1096_v24 }
  0xae   : > { %1129 = vmatpush1.bf16.msra.mxu1 %v1128_v25  ;;  %1099 = vmatprep.subr.bf16.mxu0 %v1098_v26 }
  0xaf   : > { %1131 = vmatprep.subr.bf16.mxu1 %v1130_v29 }
  0xb1   : > { %1101 = vmatpush1.bf16.msra.mxu0 %v1100_v32 }
  0xb2   : > { %1133 = vmatpush1.bf16.msra.mxu1 %v1132_v33 }
  0xb4   : > { %504 = vmatmul.mubr.f32.vlgmr.msra.gmra.mrb[0].mxu0 %v351_v34 }
  0xb5   : > { %581 = vmatmul.mubr.f32.vlgmr.msra.gmra.mrb[0].mxu1 %v351_v34  ;;  %509 = vmatprep.mubr.f32.mxu0 %v1507_v0 }
  0xb6   : > { %586 = vmatprep.mubr.f32.mxu1 %v1507_v0 }
  0xb8   : > { %510 = vmatmul.mubr.f32.gmra.mrb[2].mxu0 %v352_v35 }
  0xb9   : > { %587 = vmatmul.mubr.f32.gmra.mrb[2].mxu1 %v352_v35 }
 0x187   : > { %v505_v47 = vpop.f32.mrb[0].mxu0 }
 0x188   : > { %v1845_v48 = vadd.f32 %v505_v47, %v422_v43  ;;  %v582_v49 = vpop.f32.mrb[0].mxu1  ;;  %v507_v50 = vpop.f32.mrb[1].mxu0  ;;  %596 = sbr.rel (%p984_p2) target bundleno = 399 (0x18f), region = 60 }
 0x189   : > { %v1847_v51 = vadd.f32 %v582_v49, %v430_v44  ;;  %v508_v0 = vadd.f32 %v507_v50, %v426_v45  ;;  %v584_v52 = vpop.f32.mrb[1].mxu1 }
 0x18a   : > { %v585_v53 = vadd.f32 %v584_v52, %v434_v46 }
 0x18b   : > { %v511_v54 = vpop.f32.mrb[2].mxu0 }
 0x18c   : > { %v1849_v55 = vadd.f32 %v511_v54, %v422_v43  ;;  %v588_v56 = vpop.f32.mrb[2].mxu1  ;;  %v513_v57 = vpop.f32.mrb[3].mxu0 }
 0x18d   : > { %v1851_v58 = vadd.f32 %v588_v56, %v430_v44  ;;  %v1853_v59 = vadd.f32 %v513_v57, %v426_v45  ;;  %v590_v60 = vpop.f32.mrb[3].mxu1 }
 0x18e   : > { %v1855_v61 = vadd.f32 %v590_v60, %v434_v46 }
 0x18f PF: > { %v617_v63 = vld [vmem:[%s1770_s8 + $0x80] sm:$0xff]  ;;  %v618_v1 = vld [vmem:[%s1770_s8 + $0x88] sm:$0xff]  ;;  %729 = vmatprep.mubr.f32.mxu0 %v508_v0  ;;  %804 = vmatprep.mubr.f32.mxu1 %v585_v53  ;;  %v619_v11 = vld [vmem:[%s1770_s8 + $0x90] sm:$0xff]  ;;  %p985_p1 = scmp.ne.s32.totalorder %s1488_s21, 1 }
 0x190   : > { %v649_v2 = vld [vmem:[%s1770_s8 + $0x180] sm:$0xff]  ;;  %v1134_v3 = vpack.c.bf16 %v618_v1, %v617_v63  ;;  %v650_v4 = vld [vmem:[%s1770_s8 + $0x188] sm:$0xff]  ;;  %v620_v13 = vld [vmem:[%s1770_s8 + $0x98] sm:$0xff] }
 0x191   : > { %v601_v5 = vld [vmem:[%s1770_s8] sm:$0xff]  ;;  %v602_v6 = vld [vmem:[%s1770_s8 + $0x8] sm:$0xff]  ;;  %v1166_v7 = vpack.c.bf16 %v650_v4, %v649_v2  ;;  %v651_v14 = vld [vmem:[%s1770_s8 + $0x190] sm:$0xff]  ;;  %v1138_v16 = vpack.c.bf16 %v620_v13, %v619_v11 }
 0x192   : > { %v1136_v8 = vpack.c.bf16 %v602_v6, %v601_v5  ;;  %v633_v9 = vld [vmem:[%s1770_s8 + $0x100] sm:$0xff]  ;;  %v634_v10 = vld [vmem:[%s1770_s8 + $0x108] sm:$0xff]  ;;  %1135 = vmatprep.subr.bf16.mxu0 %v1134_v3  ;;  %v652_v15 = vld [vmem:[%s1770_s8 + $0x198] sm:$0xff] }
 0x193   : > { %v1168_v12 = vpack.c.bf16 %v634_v10, %v633_v9  ;;  %1167 = vmatprep.subr.bf16.mxu1 %v1166_v7  ;;  %v1170_v17 = vpack.c.bf16 %v652_v15, %v651_v14  ;;  %v603_v18 = vld [vmem:[%s1770_s8 + $0x10] sm:$0xff]  ;;  %v604_v19 = vld [vmem:[%s1770_s8 + $0x18] sm:$0xff]  ;;  %v621_v23 = vld [vmem:[%s1770_s8 + $0xa0] sm:$0xff] }
 0x194   : > { %1137 = vmatpush3.bf16.msra.mxu0 %v1136_v8  ;;  %v635_v20 = vld [vmem:[%s1770_s8 + $0x110] sm:$0xff]  ;;  %v1140_v21 = vpack.c.bf16 %v604_v19, %v603_v18  ;;  %v636_v22 = vld [vmem:[%s1770_s8 + $0x118] sm:$0xff]  ;;  %v622_v24 = vld [vmem:[%s1770_s8 + $0xa8] sm:$0xff] }
 0x195   : > { %1169 = vmatpush3.bf16.msra.mxu1 %v1168_v12  ;;  %1139 = vmatprep.subr.bf16.mxu0 %v1138_v16  ;;  %v1172_v25 = vpack.c.bf16 %v636_v22, %v635_v20  ;;  %v1142_v26 = vpack.c.bf16 %v622_v24, %v621_v23  ;;  %v653_v27 = vld [vmem:[%s1770_s8 + $0x1a0] sm:$0xff]  ;;  %v654_v28 = vld [vmem:[%s1770_s8 + $0x1a8] sm:$0xff]  ;;  %v623_v35 = vld [vmem:[%s1770_s8 + $0xb0] sm:$0xff] }
 0x196   : > { %1171 = vmatprep.subr.bf16.mxu1 %v1170_v17  ;;  %v605_v29 = vld [vmem:[%s1770_s8 + $0x20] sm:$0xff]  ;;  %v1174_v30 = vpack.c.bf16 %v654_v28, %v653_v27  ;;  %v606_v31 = vld [vmem:[%s1770_s8 + $0x28] sm:$0xff]  ;;  %v624_v36 = vld [vmem:[%s1770_s8 + $0xb8] sm:$0xff] }
 0x197   : > { %v637_v32 = vld [vmem:[%s1770_s8 + $0x120] sm:$0xff]  ;;  %v638_v33 = vld [vmem:[%s1770_s8 + $0x128] sm:$0xff]  ;;  %v1144_v34 = vpack.c.bf16 %v606_v31, %v605_v29  ;;  %v655_v37 = vld [vmem:[%s1770_s8 + $0x1b0] sm:$0xff]  ;;  %v1146_v39 = vpack.c.bf16 %v624_v36, %v623_v35 }
 0x198   : > { %1141 = vmatpush3.bf16.msra.mxu0 %v1140_v21  ;;  %v1176_v38 = vpack.c.bf16 %v638_v33, %v637_v32  ;;  %v656_v40 = vld [vmem:[%s1770_s8 + $0x1b8] sm:$0xff]  ;;  %v607_v41 = vld [vmem:[%s1770_s8 + $0x30] sm:$0xff]  ;;  %v625_v46 = vld [vmem:[%s1770_s8 + $0xc0] sm:$0xff] }
 0x199   : > { %1173 = vmatpush3.bf16.msra.mxu1 %v1172_v25  ;;  %1143 = vmatprep.subr.bf16.mxu0 %v1142_v26  ;;  %v608_v42 = vld [vmem:[%s1770_s8 + $0x38] sm:$0xff]  ;;  %v1178_v43 = vpack.c.bf16 %v656_v40, %v655_v37  ;;  %v639_v44 = vld [vmem:[%s1770_s8 + $0x130] sm:$0xff]  ;;  %v626_v47 = vld [vmem:[%s1770_s8 + $0xc8] sm:$0xff] }
 0x19a   : > { %1175 = vmatprep.subr.bf16.mxu1 %v1174_v30  ;;  %v640_v45 = vld [vmem:[%s1770_s8 + $0x138] sm:$0xff]  ;;  %v657_v49 = vld [vmem:[%s1770_s8 + $0x1c0] sm:$0xff]  ;;  %v658_v50 = vld [vmem:[%s1770_s8 + $0x1c8] sm:$0xff]  ;;  %v1148_v0 = vpack.c.bf16 %v608_v42, %v607_v41  ;;  %v1150_v53 = vpack.c.bf16 %v626_v47, %v625_v46 }
 0x19b   : > { %v1180_v52 = vpack.c.bf16 %v640_v45, %v639_v44  ;;  %v609_v54 = vld [vmem:[%s1770_s8 + $0x40] sm:$0xff]  ;;  %v610_v56 = vld [vmem:[%s1770_s8 + $0x48] sm:$0xff]  ;;  %v1182_v60 = vpack.c.bf16 %v658_v50, %v657_v49  ;;  %v627_v63 = vld [vmem:[%s1770_s8 + $0xd0] sm:$0xff] }
 0x19c   : > { %1145 = vmatpush3.bf16.msra.mxu0 %v1144_v34  ;;  %v641_v57 = vld [vmem:[%s1770_s8 + $0x140] sm:$0xff]  ;;  %v642_v62 = vld [vmem:[%s1770_s8 + $0x148] sm:$0xff]  ;;  %v628_v1 = vld [vmem:[%s1770_s8 + $0xd8] sm:$0xff]  ;;  %v1152_v4 = vpack.c.bf16 %v610_v56, %v609_v54 }
 0x19d   : > { %1177 = vmatpush3.bf16.msra.mxu1 %v1176_v38  ;;  %1147 = vmatprep.subr.bf16.mxu0 %v1146_v39  ;;  %v659_v2 = vld [vmem:[%s1770_s8 + $0x1d0] sm:$0xff]  ;;  %v660_v3 = vld [vmem:[%s1770_s8 + $0x1d8] sm:$0xff]  ;;  %v1184_v5 = vpack.c.bf16 %v642_v62, %v641_v57  ;;  %v1154_v6 = vpack.c.bf16 %v628_v1, %v627_v63  ;;  %v629_v12 = vld [vmem:[%s1770_s8 + $0xe0] sm:$0xff] }
 0x19e   : > { %1179 = vmatprep.subr.bf16.mxu1 %v1178_v43  ;;  %v611_v7 = vld [vmem:[%s1770_s8 + $0x50] sm:$0xff]  ;;  %v612_v8 = vld [vmem:[%s1770_s8 + $0x58] sm:$0xff]  ;;  %v1186_v10 = vpack.c.bf16 %v660_v3, %v659_v2  ;;  %v630_v13 = vld [vmem:[%s1770_s8 + $0xe8] sm:$0xff] }
 0x19f   : > { %v643_v9 = vld [vmem:[%s1770_s8 + $0x150] sm:$0xff]  ;;  %v644_v11 = vld [vmem:[%s1770_s8 + $0x158] sm:$0xff]  ;;  %v661_v14 = vld [vmem:[%s1770_s8 + $0x1e0] sm:$0xff]  ;;  %v1156_v16 = vpack.c.bf16 %v612_v8, %v611_v7  ;;  %v1158_v18 = vpack.c.bf16 %v630_v13, %v629_v12 }
 0x1a0   : > { %1149 = vmatpush3.bf16.msra.mxu0 %v1148_v0  ;;  %v662_v15 = vld [vmem:[%s1770_s8 + $0x1e8] sm:$0xff]  ;;  %v1188_v17 = vpack.c.bf16 %v644_v11, %v643_v9  ;;  %v613_v19 = vld [vmem:[%s1770_s8 + $0x60] sm:$0xff]  ;;  %v631_v24 = vld [vmem:[%s1770_s8 + $0xf0] sm:$0xff] }
 0x1a1   : > { %1181 = vmatpush3.bf16.msra.mxu1 %v1180_v52  ;;  %1151 = vmatprep.subr.bf16.mxu0 %v1150_v53  ;;  %v614_v20 = vld [vmem:[%s1770_s8 + $0x68] sm:$0xff]  ;;  %v645_v21 = vld [vmem:[%s1770_s8 + $0x160] sm:$0xff]  ;;  %v1190_v22 = vpack.c.bf16 %v662_v15, %v661_v14  ;;  %v632_v25 = vld [vmem:[%s1770_s8 + $0xf8] sm:$0xff] }
 0x1a2   : > { %1183 = vmatprep.subr.bf16.mxu1 %v1182_v60  ;;  %v646_v23 = vld [vmem:[%s1770_s8 + $0x168] sm:$0xff]  ;;  %v663_v26 = vld [vmem:[%s1770_s8 + $0x1f0] sm:$0xff]  ;;  %v664_v27 = vld [vmem:[%s1770_s8 + $0x1f8] sm:$0xff]  ;;  %v1160_v28 = vpack.c.bf16 %v614_v20, %v613_v19  ;;  %v1162_v30 = vpack.c.bf16 %v632_v25, %v631_v24 }
 0x1a3   : > { %v1192_v29 = vpack.c.bf16 %v646_v23, %v645_v21  ;;  %v615_v31 = vld [vmem:[%s1770_s8 + $0x70] sm:$0xff]  ;;  %v616_v32 = vld [vmem:[%s1770_s8 + $0x78] sm:$0xff]  ;;  %v1194_v33 = vpack.c.bf16 %v664_v27, %v663_v26 }
 0x1a4   : > { %1153 = vmatpush3.bf16.msra.mxu0 %v1152_v4  ;;  %v647_v34 = vld [vmem:[%s1770_s8 + $0x170] sm:$0xff]  ;;  %v648_v35 = vld [vmem:[%s1770_s8 + $0x178] sm:$0xff]  ;;  %v1164_v36 = vpack.c.bf16 %v616_v32, %v615_v31 }
 0x1a5   : > { %1185 = vmatpush3.bf16.msra.mxu1 %v1184_v5  ;;  %1155 = vmatprep.subr.bf16.mxu0 %v1154_v6  ;;  %v1196_v37 = vpack.c.bf16 %v648_v35, %v647_v34  ;;  %v599_v44 = vld [vmem:[#allocation2] sm:$0xff] }
 0x1a6   : > { %1187 = vmatprep.subr.bf16.mxu1 %v1186_v10  ;;  %v986_v52 = vld [vmem:[%s1977_s4] ss:$0 sm:$0xff] (!%p985_p1) }
 0x1a8   : > { %1157 = vmatpush3.bf16.msra.mxu0 %v1156_v16 }
 0x1a9   : > { %1189 = vmatpush3.bf16.msra.mxu1 %v1188_v17  ;;  %1159 = vmatprep.subr.bf16.mxu0 %v1158_v18 }
 0x1aa   : > { %1191 = vmatprep.subr.bf16.mxu1 %v1190_v22 }
 0x1ac   : > { %1161 = vmatpush3.bf16.msra.mxu0 %v1160_v28 }
 0x1ad   : > { %1193 = vmatpush3.bf16.msra.mxu1 %v1192_v29  ;;  %1163 = vmatprep.subr.bf16.mxu0 %v1162_v30 }
 0x1ae   : > { %1195 = vmatprep.subr.bf16.mxu1 %v1194_v33 }
 0x1b0   : > { %1165 = vmatpush3.bf16.msra.mxu0 %v1164_v36 }
 0x1b1   : > { %1197 = vmatpush3.bf16.msra.mxu1 %v1196_v37 }
 0x1b3   : > { %730 = vmatmul.mubr.f32.vlgmr.msra.gmra.mrb[4].mxu0 %v1845_v48 }
 0x1b4   : > { %805 = vmatmul.mubr.f32.vlgmr.msra.gmra.mrb[4].mxu1 %v1847_v51  ;;  %734 = vmatprep.mubr.f32.mxu0 %v1853_v59 }
 0x1b5   : > { %809 = vmatprep.mubr.f32.mxu1 %v1855_v61  ;;  %v600_v61 = vld [vmem:[#allocation2 + $0x8] sm:$0xff] }
 0x1b7   : > { %735 = vmatmul.mubr.f32.gmra.mrb[6].mxu0 %v1849_v55 }
 0x1b8   : > { %810 = vmatmul.mubr.f32.gmra.mrb[6].mxu1 %v1851_v58 }
 0x286   : > { %v1026_v38 = vpop.f32.mrb[4].mxu0 }
 0x287   : > { %v1064_v39 = vpop.f32.mrb[4].mxu1  ;;  %v1027_v40 = vpop.f32.mrb[5].mxu0 }
 0x288   : > { %v1028_v41 = vadd.f32 %v1027_v40, %v1026_v38  ;;  %v1065_v42 = vpop.f32.mrb[5].mxu1 }
 0x289   : > { %v1066_v43 = vadd.f32 %v1065_v42, %v1064_v39 }
 0x28a   : > { %v1029_v45 = vpop.f32.mrb[6].mxu0 }
 0x28b   : > { %v807_v46 = vadd.f32 %v1066_v43, %v1028_v41  ;;  %v1067_v48 = vpop.f32.mrb[6].mxu1  ;;  %v1030_v47 = vpop.f32.mrb[7].mxu0 }
 0x28c   : > { %v1031_v51 = vadd.f32 %v1030_v47, %v1029_v45  ;;  %v1068_v49 = vpop.f32.mrb[7].mxu1 }
 0x28d   : > { %v815_v59 = vadd.f32 %v807_v46, %v599_v44  ;;  %v1069_v50 = vadd.f32 %v1068_v49, %v1067_v48  ;;  %822 = sbr.rel (%p985_p1) target bundleno = 670 (0x29e), region = 64 }
 0x28f   : > { %817 = vst [vmem:[#allocation2] sm:$0xff] %v815_v59  ;;  %v812_v55 = vadd.f32 %v1069_v50, %v1031_v51 }
 0x291   : > { %v816_v0 = vadd.f32 %v812_v55, %v600_v61 }
 0x293   : > { %818 = vst [vmem:[#allocation2 + $0x8] sm:$0xff] %v816_v0 }
 0x296   : > { %v823_v58 = vld [vmem:[#allocation2] sm:$0xff] }
 0x297   : > { %v832_v54 = vadd.f32 %v986_v52, %v823_v58 }
 0x299   : > { %834 = vst [vmem:[#allocation11] sm:$0xff] %v832_v54 }
 0x29a   : > { %v824_v53 = vld [vmem:[#allocation2 + $0x8] sm:$0xff] }
 0x29b   : > { %v833_v56 = vadd.f32 %v986_v52, %v824_v53 }
 0x29d   : > { %835 = vst [vmem:[#allocation11 + $0x8] sm:$0xff] %v833_v56 }
 0x29e PF: > { %p1229_p4 = scmp.eq.s32.totalorder %s1635_s25, 1  ;;  %s1509_s7 = smov [#allocation11]  }
 0x29f   : > { %s845_s14 = sshll.u32 %s1509_s7, 4  ;;  %s846_s14 = int_to_ptr.vmem [resolvable:$true] %s845_s14 }
 0x2a0   : > { %s1408_s17 = scalar_lea.vmem %s846_s14, 256  ;;  %p1415_p7 = scmp.lt.s32.totalorder %s846_s14, %s846_s14 }
 0x2a1   : > { %p1409_p6 = scmp.ne.s32.totalorder %s846_s14, %s1408_s17  ;;  %p1416_p9 = scmp.lt.s32.totalorder %s1408_s17, %s1408_s17 }
 0x2a3   : > { %p1410_p13 = pnand %p1409_p6, %p1229_p4  ;;  %p1417_p12 = por %p1416_p9, %p1415_p7 }
 0x2a5   : > { %p1411_p3 = pneg %p1410_p13 }
 0x2a7   : > { %p1418_p10 = pnand %p1417_p12, %p1411_p3 }
 0x2a9   : > { %1421 = shalt.err (!%p1418_p10)
}
 0x2aa   : > { %s1422_s16 = scalar_lea.hbm %s1978_s5, 256 }
 0x2ab   : > { %p1423_p8 = scmp.ne.s32.totalorder %s1978_s5, %s1422_s16  ;;  %p1428_p0 = scmp.lt.u32.totalorder %s1422_s16, %s1978_s5 }
 0x2ad   : > { %p1424_p11 = pnand %p1423_p8, %p1229_p4 }
 0x2af   : > { %p1425_p5 = pneg %p1424_p11 }
 0x2b1   : > { %p1430_p2 = pnand %p1428_p0, %p1425_p5 }
 0x2b3   : > { %1433 = shalt.err (!%p1430_p2)
}
 0x2b4   : > { %s1510_s10 = smov 128   ;;  %s1511_s15 = smov 8  }
 0x2b5   : > { %1209 = dma.vmem_to_hbm [thread:$0]  (%p1229_p4), %s846_s14, 256, %s1978_s5, [#allocation5], %s1510_s10, %s1510_s10, %s1511_s15  }
 0x2b6   : > { %1471 = dma.done.wait (%p1229_p4), [#allocation5], 256  }
 0x2b7   : > { %1473 = vsyncadd (%p1229_p4), [#allocation5], 4294967040 }
 0x2b8 PF: > { %s23_s23 = sadd.s32 1, %s1496_s23   ;;  %s2004_s28 = sld [smem:[#allocation17_spill]] }
 0x2b9   : > { %p20_p1 = scmp.ge.s32.totalorder %s23_s23, 4   ;;  %s2005_s29 = sld [smem:[#allocation16_spill]] }
 0x2ba   : > { %s2006_s18 = smov %s1480_s19  ;;  %s2007_s19 = smov %s1484_s20 }
 0x2bb   : > { %s2009_s21 = smov %s1492_s22  ;;  %22 = sbr.rel (!%p20_p1) target bundleno = 10 (0xa), region = 116 }
 0x2be   : > { %s2008_s20 = smov %s2004_s28 }
 0x2bf   : > { %s2010_s22 = smov %s2005_s29 }
 0x2c2   :  { %861 = vsyncpa [#allocation4], 1 }
 0x2c3   :  { %863 = vsyncpa [#allocation4 + $0x1], 1 }
 0x2c4   :  { %864 = vsyncpa [#allocation7], 1 }
 0x2c5   :  { %866 = vsyncpa [#allocation7 + $0x1], 1 }
 0x2c6   :  { %867 = vsyncpa [#allocation10], 1 }
 0x2c7   :  { %869 = vsyncpa [#allocation10 + $0x1], 1 }
 0x2c8   :  { %870 = vsyncpa [#allocation5], 1 }
 0x2c9   :  { %872 = vsyncpa [#allocation5 + $0x1], 1 }

</bundles_post_ra>
